<compile_context>
chip_gen: v7x
topology: tpu7x:2x2x1
jax: 0.10.0
libtpu: 0.0.40
codegen_flags: <defaults>
</compile_context>

<pallas_src>
import math
import functools

import jax
import jax.numpy as jnp
from jax.experimental import pallas as pl
from jax.experimental.pallas import tpu as pltpu


_SQRT_HALF = 1.0 / math.sqrt(2.0)
# f32 (tm, tn) intermediates (MXU result + GELU temporaries) assumed live at
# once when estimating the VMEM footprint of a tile configuration.
_F32_TMP = 3


def _round_up(a, b):
    return ((a + b - 1) // b) * b


@functools.lru_cache(maxsize=None)
def _vmem_budget():
    """(working-set budget, Mosaic scoped-vmem limit) -- generation aware."""
    try:
        cap = int(pltpu.get_tpu_info().vmem_capacity_bytes)
        cap = max(16 * 1024 * 1024, min(cap, 256 * 1024 * 1024))
    except Exception:
        cap = 64 * 1024 * 1024          # conservative default (v7x: 64 MiB/core)
    return int(cap * 0.70), int(cap * 0.80)


def _erf(x):
    # Abramowitz & Stegun 7.1.26 rational approximation (max abs err ~1.5e-7),
    # built only from ops with guaranteed Mosaic lowerings.  The exp goes to
    # the EUP; the divide is an EUP approx reciprocal + one Newton-Raphson
    # step (full f32 accuracy, frees VALU slots).
    a1, a2, a3, a4, a5 = (0.254829592, -0.284496736, 1.421413741,
                          -1.453152027, 1.061405429)
    p = 0.3275911
    ax = jnp.abs(x)
    d = 1.0 + p * ax
    r = pl.reciprocal(d, approx=True)       # EUP slot
    t = r * (2.0 - d * r)                   # NR step -> f32-accurate 1/d
    poly = ((((a5 * t + a4) * t + a3) * t + a2) * t + a1) * t
    y = 1.0 - poly * jnp.exp(-ax * ax)
    return jnp.where(x >= 0, y, -y)


def _gelu_exact(x):
    # matches torch.nn.GELU() default (erf-based, non-approximate)
    return 0.5 * x * (1.0 + _erf(x * _SQRT_HALF))


def _embed_block_kernel(*refs, tn, col_axis, k_axis, resid_mode):
    """resid_mode: None | 'slice' (residual read from the resident full-K x
    block) | 'ref' (separate column-tiled residual input; K-tiled path only)."""
    it = iter(refs)
    x_ref = next(it)
    xr_ref = next(it) if resid_mode == "ref" else None
    w_ref = next(it)
    b_ref = next(it)
    o_ref = next(it)
    acc_ref = next(it) if k_axis is not None else None

    xv = x_ref[...]
    # Native-dtype MXU operands; f32 accumulation on the MXU.
    part = jnp.dot(xv, w_ref[...], preferred_element_type=jnp.float32)

    def finish(acc):
        y = acc + b_ref[...].astype(jnp.float32)
        y = _gelu_exact(y)
        if resid_mode == "slice":
            if col_axis is None:
                xr = xv                                  # tn == out_dims == in_dims
            else:
                start = pl.multiple_of(pl.program_id(col_axis) * tn, 128)
                xr = x_ref[:, pl.ds(start, tn)]          # no duplicate x DMA
            y = y + xr.astype(jnp.float32)
        elif resid_mode == "ref":
            y = y + xr_ref[...].astype(jnp.float32)
        o_ref[...] = y.astype(o_ref.dtype)

    if k_axis is None:
        finish(part)
    else:
        @pl.when(pl.program_id(k_axis) == 0)
        def _():
            acc_ref[...] = jnp.zeros_like(acc_ref)

        acc_ref[...] += part

        @pl.when(pl.program_id(k_axis) == pl.num_programs(k_axis) - 1)
        def _():
            finish(acc_ref[...])


def embed_block(x, weight, bias, *, resid=True,
                block_rows=None, block_cols=None, block_k=None):
    """EmbedBlock forward: gelu(x @ W + b) (+ x when resid and in_dims == out_dims,
    exactly the PyTorch module's rule).

    x:      (N, in_dims)
    weight: (in_dims, out_dims)   (transposed relative to torch nn.Linear)
    bias:   (out_dims,)
    block_rows / block_cols / block_k: optional tile overrides (None = auto).
    """
    n, in_dims = x.shape
    k_dim, out_dims = weight.shape
    assert k_dim == in_dims, "weight must be (in_dims, out_dims)"
    do_resid = bool(resid) and (in_dims == out_dims)     # matches the module

    x_isz = jnp.dtype(x.dtype).itemsize
    w_isz = jnp.dtype(weight.dtype).itemsize
    b_isz = jnp.dtype(bias.dtype).itemsize
    o_isz = x_isz

    budget, vmem_limit = _vmem_budget()

    # Rows: only align to the 8-sublane multiple (<= 7 pad rows, no full-tile
    # pad copy); ragged row tiles use a cdiv grid with masked edge stores.
    n_al = _round_up(max(n, 1), 8)
    x_p = x if n_al == n else jnp.pad(x, ((0, n_al - n), (0, 0)))

    # Row-tile cap: user override / 1024 default; keep >= 2 row tiles when
    # there is enough work so the 'parallel' row axis shards across v7x's two
    # TensorCores (single-TC chips are unaffected).
    row_cap = min(n_al, 1024 if block_rows is None
                  else max(8, (int(block_rows) // 8) * 8))
    if n_al >= 16:
        row_cap = min(row_cap, _round_up(-(-n_al // 2), 8))

    def tm_for(tn_, tk_, resid_ref_):
        """Largest row tile (multiple of 8, <= row_cap) whose working set fits
        the budget: double-buffered x/W/bias/out tiles + f32 intermediates
        (+ f32 accumulator scratch and residual tile where applicable)."""
        kx = tk_ if tk_ is not None else in_dims
        fixed = 2 * (kx * tn_ * w_isz + tn_ * b_isz)
        per_row = 2 * (kx * x_isz + tn_ * o_isz) + _F32_TMP * tn_ * 4
        if tk_ is not None:
            per_row += tn_ * 4                    # f32 accumulator scratch
        if resid_ref_:
            per_row += 2 * tn_ * x_isz            # separate residual tile
        avail = budget - fixed
        if avail < 8 * per_row:
            return 0
        return int(min(row_cap, (avail // per_row) // 8 * 8))

    def col_candidates():
        if out_dims % 128 != 0:
            return [out_dims]                     # keep the full (masked) width
        return [d for d in range(out_dims, 0, -128) if out_dims % d == 0]

    def pick_tn(limit_):
        cands = [d for d in col_candidates() if d <= max(int(limit_), 128)]
        if not cands:
            return col_candidates()[-1]
        best = cands[0]
        if best % 256 != 0:                       # prefer 256-multiples (MXU)
            b256 = next((d for d in cands if d % 256 == 0), None)
            if b256 is not None and 2 * b256 >= best:
                best = b256
        return best

    # ------------------------- path / tile selection -------------------------
    tn = None
    tk = None
    if block_k is not None and in_dims % 128 == 0 and in_dims > 128:
        tk = min(in_dims, max(128, (int(block_k) // 128) * 128))
        while in_dims % tk != 0:
            tk -= 128
        if tk >= in_dims:
            tk = None
    if block_cols is not None and int(block_cols) < out_dims:
        tn = pick_tn(block_cols)
        if tn >= out_dims:
            tn = out_dims

    if tn is None:
        want_tm = min(128, row_cap)
        if tk is None and tm_for(out_dims, None, False) >= want_tm:
            tn = out_dims                         # weight-resident path
        else:
            cands = [d for d in col_candidates() if d < out_dims] or [out_dims]
            resid_ref_now = do_resid and tk is not None
            tn = next((d for d in cands
                       if tm_for(d, tk, resid_ref_now) >= want_tm), None)
            if tn is not None and tn % 256 != 0:
                b256 = next((d for d in cands if d % 256 == 0 and d <= tn), None)
                if b256 is not None and 2 * b256 >= tn:
                    tn = b256
            if tn is None:
                if tk is None and in_dims % 128 == 0 and in_dims > 128:
                    # even minimal full-K tiles overflow -> K-tile (accumulator)
                    tn = pick_tn(512)
                    tk = next((ck for ck in range(min(in_dims, 4096), 127, -128)
                               if in_dims % ck == 0
                               and tm_for(tn, ck, do_resid) >= min(64, row_cap)),
                              128)
                else:
                    tn = cands[-1]                # best effort; limit has headroom

    resid_mode = None
    if do_resid:
        resid_mode = "ref" if tk is not None else "slice"

    tm = tm_for(tn, tk, resid_mode == "ref")
    if tm < 8:
        tm = 8                                    # best effort
    tm = min(tm, row_cap)

    grid_rows = pl.cdiv(n_al, tm)
    grid_cols = pl.cdiv(out_dims, tn)             # tn divides (or equals) out_dims

    # ------------------------------ specs / grid ------------------------------
    if tk is not None:
        grid = (grid_cols, grid_rows, pl.cdiv(in_dims, tk))
        col_axis, k_axis = 0, 2
        dims_sem = ("parallel", "parallel", "arbitrary")
        x_spec = pl.BlockSpec((tm, tk), lambda j, i, k: (i, k))
        xr_spec = pl.BlockSpec((tm, tn), lambda j, i, k: (i, j))
        w_spec = pl.BlockSpec((tk, tn), lambda j, i, k: (k, j))
        b_spec = pl.BlockSpec((1, tn), lambda j, i, k: (0, j))
        o_spec = pl.BlockSpec((tm, tn), lambda j, i, k: (i, j))
        scratch = [pltpu.VMEM((tm, tn), jnp.float32)]
        x_reads, w_reads = grid_cols, grid_rows
    elif grid_cols > 1:
        # Column axis OUTER, rows INNER: the (K, tn) weight block is invariant
        # across the whole inner row sweep -> fetched once per column tile.
        grid = (grid_cols, grid_rows)
        col_axis, k_axis = 0, None
        dims_sem = ("parallel", "parallel")
        x_spec = pl.BlockSpec((tm, in_dims), lambda j, i: (i, 0))
        xr_spec = None
        w_spec = pl.BlockSpec((in_dims, tn), lambda j, i: (0, j))
        b_spec = pl.BlockSpec((1, tn), lambda j, i: (0, j))
        o_spec = pl.BlockSpec((tm, tn), lambda j, i: (i, j))
        scratch = []
        x_reads, w_reads = grid_cols, 1
    else:
        # Weight resident: 1-D row grid; W / bias block index is constant, so
        # the pipeline fetches them exactly once for the whole kernel.
        grid = (grid_rows,)
        col_axis, k_axis = None, None
        dims_sem = ("parallel",)
        x_spec = pl.BlockSpec((tm, in_dims), lambda i: (i, 0))
        xr_spec = None
        w_spec = pl.BlockSpec((in_dims, tn), lambda i: (0, 0))
        b_spec = pl.BlockSpec((1, tn), lambda i: (0, 0))
        o_spec = pl.BlockSpec((tm, tn), lambda i: (i, 0))
        scratch = []
        x_reads, w_reads = 1, 1

    in_specs = [x_spec]
    args = [x_p]
    if resid_mode == "ref":
        in_specs.append(xr_spec)
        args.append(x_p)
    in_specs += [w_spec, b_spec]
    args += [weight, bias.reshape(1, out_dims)]

    # Advisory cost estimate so XLA schedules neighbors around the custom call.
    flops = int(2 * n_al * in_dims * out_dims + 30 * n_al * out_dims)
    bytes_accessed = int(
        x_isz * n_al * in_dims * (x_reads + (1 if resid_mode == "ref" else 0))
        + w_isz * in_dims * out_dims * w_reads
        + b_isz * out_dims
        + o_isz * n_al * out_dims)
    cost = pl.CostEstimate(flops=flops,
                           transcendentals=2 * n_al * out_dims,
                           bytes_accessed=bytes_accessed)

    kernel = functools.partial(_embed_block_kernel, tn=tn, col_axis=col_axis,
                               k_axis=k_axis, resid_mode=resid_mode)
    out = pl.pallas_call(
        kernel,
        out_shape=jax.ShapeDtypeStruct((n_al, out_dims), x.dtype),
        grid_spec=pltpu.PrefetchScalarGridSpec(
            num_scalar_prefetch=0,
            grid=grid,
            in_specs=in_specs,
            out_specs=o_spec,
            scratch_shapes=scratch),
        compiler_params=pltpu.CompilerParams(
            dimension_semantics=dims_sem,
            vmem_limit_bytes=vmem_limit),
        cost_estimate=cost,
    )(*args)

    return out if n_al == n else out[:n]


if __name__ == "__main__":
    key = jax.random.PRNGKey(0)
    k_x, k_w, k_b, k_w2, k_b2, k_x3, k_w3, k_b3 = jax.random.split(key, 8)

    # 1) module-default shapes: (batch, seq, hidden) with in_dims == out_dims
    batch, seq, in_dims, out_dims = 2, 8, 32, 32
    x3 = jax.random.normal(k_x, (batch, seq, in_dims), dtype=jnp.float32)
    limit = 1.0 / math.sqrt(in_dims)      # nn.Linear-style uniform init bound
    weight = jax.random.uniform(k_w, (in_dims, out_dims), jnp.float32, -limit, limit)
    bias = jax.random.uniform(k_b, (out_dims,), jnp.float32, -limit, limit)

    x2 = x3.reshape(batch * seq, in_dims)          # glue: flatten to (N, D)
    out = jax.block_until_ready(embed_block(x2, weight, bias, resid=True))
    ref = x2 + jax.nn.gelu(x2 @ weight + bias, approximate=False)
    err = float(jnp.max(jnp.abs(out - ref)))
    assert jnp.allclose(out, ref, atol=1e-4, rtol=1e-4), f"test1 max abs err {err}"

    # 2) non-residual path, lane-dense 128-wide output (weight-resident path)
    out2_dims = 128
    weight2 = jax.random.uniform(k_w2, (in_dims, out2_dims), jnp.float32, -limit, limit)
    bias2 = jax.random.uniform(k_b2, (out2_dims,), jnp.float32, -limit, limit)
    out2 = jax.block_until_ready(embed_block(x2, weight2, bias2, resid=False))
    ref2 = jax.nn.gelu(x2 @ weight2 + bias2, approximate=False)
    err2 = float(jnp.max(jnp.abs(out2 - ref2)))
    assert jnp.allclose(out2, ref2, atol=1e-4, rtol=1e-4), f"test2 max abs err {err2}"

    # 3) / 4) exercise the column-split and K-tiled fallback paths with small
    # forced tiles.  Inputs are multiples of 0.25 so the matmul is exact in
    # every MXU precision mode; only the GELU approximation differs.
    n3, d3 = 32, 256
    xb = jax.random.randint(k_x3, (n3, d3), -2, 3).astype(jnp.float32) * 0.5
    wb = jax.random.randint(k_w3, (d3, d3), -2, 3).astype(jnp.float32) * 0.5
    bb = jax.random.randint(k_b3, (d3,), -2, 3).astype(jnp.float32) * 0.5
    ref3 = xb + jax.nn.gelu(xb @ wb + bb, approximate=False)

    out3 = jax.block_until_ready(
        embed_block(xb, wb, bb, resid=True, block_rows=16, block_cols=128))
    err3 = float(jnp.max(jnp.abs(out3 - ref3)))
    assert jnp.allclose(out3, ref3, atol=1e-4, rtol=1e-4), f"test3 max abs err {err3}"

    out4 = jax.block_until_ready(
        embed_block(xb, wb, bb, resid=True,
                    block_rows=16, block_cols=128, block_k=128))
    err4 = float(jnp.max(jnp.abs(out4 - ref3)))
    assert jnp.allclose(out4, ref3, atol=1e-4, rtol=1e-4), f"test4 max abs err {err4}"

    print("KERNEL_OK")
</pallas_src>

<mosaic_0001>
module attributes {stable_mosaic.version = 11 : i64} {
  func.func @_embed_block_kernel(%arg0: i32, %arg1: memref<8x32xf32, #tpu.memory_space<vmem>>, %arg2: memref<32x32xf32, #tpu.memory_space<vmem>>, %arg3: memref<1x32xf32, #tpu.memory_space<vmem>>, %arg4: memref<8x32xf32, #tpu.memory_space<vmem>>) attributes {dimension_semantics = [#tpu.dimension_semantics<parallel>], iteration_bounds = array<i64: 2>, scalar_prefetch = 0 : i64, scratch_operands = 0 : i64, tpu.core_type = #tpu.core_type<tc>, window_params = [{transform_indices = @transform_0, window_bounds = array<i64: 8, 32>}, {pipeline_mode = #tpu.pipeline_mode<synchronous>, transform_indices = @transform_1, window_bounds = array<i64: 32, 32>}, {pipeline_mode = #tpu.pipeline_mode<synchronous>, transform_indices = @transform_2, window_bounds = array<i64: 1, 32>}, {transform_indices = @transform_3, window_bounds = array<i64: 8, 32>}]} {
    %c0 = arith.constant 0 : index
    %c0_0 = arith.constant 0 : index
    %0 = vector.load %arg1[%c0, %c0_0] : memref<8x32xf32, #tpu.memory_space<vmem>>, vector<8x32xf32>
    %c0_1 = arith.constant 0 : index
    %c0_2 = arith.constant 0 : index
    %1 = vector.load %arg2[%c0_1, %c0_2] : memref<32x32xf32, #tpu.memory_space<vmem>>, vector<32x32xf32>
    %cst = arith.constant dense<0.000000e+00> : vector<8x32xf32>
    %2 = tpu.matmul %0, %1, %cst {dimension_numbers = #tpu.dot_dimension_numbers<[1], [0], [0], [1], [0, 0, 1, 1], [], []>} : vector<8x32xf32>, vector<32x32xf32>, vector<8x32xf32> -> vector<8x32xf32>
    %c0_3 = arith.constant 0 : index
    %c0_4 = arith.constant 0 : index
    %3 = vector.load %arg3[%c0_3, %c0_4] : memref<1x32xf32, #tpu.memory_space<vmem>>, vector<1x32xf32>
    %4 = vector.broadcast %3 : vector<1x32xf32> to vector<8x32xf32>
    %5 = arith.addf %2, %4 : vector<8x32xf32>
    %cst_5 = arith.constant 5.000000e-01 : f32
    %6 = vector.broadcast %cst_5 : f32 to vector<8x32xf32>
    %7 = arith.mulf %6, %5 : vector<8x32xf32>
    %cst_6 = arith.constant 0.707106769 : f32
    %8 = vector.broadcast %cst_6 : f32 to vector<8x32xf32>
    %9 = arith.mulf %5, %8 : vector<8x32xf32>
    %10 = math.absf %9 : vector<8x32xf32>
    %cst_7 = arith.constant 0.327591091 : f32
    %11 = vector.broadcast %cst_7 : f32 to vector<8x32xf32>
    %12 = arith.mulf %11, %10 : vector<8x32xf32>
    %cst_8 = arith.constant 1.000000e+00 : f32
    %13 = vector.broadcast %cst_8 : f32 to vector<8x32xf32>
    %14 = arith.addf %13, %12 : vector<8x32xf32>
    %15 = tpu.reciprocal %14 {approx = true} : vector<8x32xf32> -> vector<8x32xf32>
    %16 = arith.mulf %14, %15 : vector<8x32xf32>
    %cst_9 = arith.constant 2.000000e+00 : f32
    %17 = vector.broadcast %cst_9 : f32 to vector<8x32xf32>
    %18 = arith.subf %17, %16 : vector<8x32xf32>
    %19 = arith.mulf %15, %18 : vector<8x32xf32>
    %cst_10 = arith.constant 1.06140542 : f32
    %20 = vector.broadcast %cst_10 : f32 to vector<8x32xf32>
    %21 = arith.mulf %20, %19 : vector<8x32xf32>
    %cst_11 = arith.constant -1.45315206 : f32
    %22 = vector.broadcast %cst_11 : f32 to vector<8x32xf32>
    %23 = arith.addf %21, %22 : vector<8x32xf32>
    %24 = arith.mulf %23, %19 : vector<8x32xf32>
    %cst_12 = arith.constant 1.42141378 : f32
    %25 = vector.broadcast %cst_12 : f32 to vector<8x32xf32>
    %26 = arith.addf %24, %25 : vector<8x32xf32>
    %27 = arith.mulf %26, %19 : vector<8x32xf32>
    %cst_13 = arith.constant -0.284496725 : f32
    %28 = vector.broadcast %cst_13 : f32 to vector<8x32xf32>
    %29 = arith.addf %27, %28 : vector<8x32xf32>
    %30 = arith.mulf %29, %19 : vector<8x32xf32>
    %cst_14 = arith.constant 0.254829586 : f32
    %31 = vector.broadcast %cst_14 : f32 to vector<8x32xf32>
    %32 = arith.addf %30, %31 : vector<8x32xf32>
    %33 = arith.mulf %32, %19 : vector<8x32xf32>
    %cst_15 = arith.constant 0.000000e+00 : f32
    %34 = vector.broadcast %cst_15 : f32 to vector<8x32xf32>
    %35 = arith.subf %34, %10 : vector<8x32xf32>
    %36 = arith.mulf %35, %10 : vector<8x32xf32>
    %37 = math.exp %36 : vector<8x32xf32>
    %38 = arith.mulf %33, %37 : vector<8x32xf32>
    %cst_16 = arith.constant 1.000000e+00 : f32
    %39 = vector.broadcast %cst_16 : f32 to vector<8x32xf32>
    %40 = arith.subf %39, %38 : vector<8x32xf32>
    %cst_17 = arith.constant 0.000000e+00 : f32
    %41 = vector.broadcast %cst_17 : f32 to vector<8x32xf32>
    %42 = arith.cmpf oge, %9, %41 : vector<8x32xf32>
    %cst_18 = arith.constant 0.000000e+00 : f32
    %43 = vector.broadcast %cst_18 : f32 to vector<8x32xf32>
    %44 = arith.subf %43, %40 : vector<8x32xf32>
    %45 = arith.select %42, %40, %44 : vector<8x32xi1>, vector<8x32xf32>
    %cst_19 = arith.constant 1.000000e+00 : f32
    %46 = vector.broadcast %cst_19 : f32 to vector<8x32xf32>
    %47 = arith.addf %46, %45 : vector<8x32xf32>
    %48 = arith.mulf %7, %47 : vector<8x32xf32>
    %49 = arith.addf %48, %0 : vector<8x32xf32>
    %c0_20 = arith.constant 0 : index
    %c0_21 = arith.constant 0 : index
    %50 = vector.load %arg4[%c0_20, %c0_21] : memref<8x32xf32, #tpu.memory_space<vmem>>, vector<8x32xf32>
    tpu.vector_store %arg4[%c0_20, %c0_21], %49 {strides = array<i32>} : memref<8x32xf32, #tpu.memory_space<vmem>>, vector<8x32xf32>,
    return
  }
  func.func @transform_0(%arg0: i32) -> (i32, i32) {
    %c0_i32 = arith.constant 0 : i32
    %c0_i32_0 = arith.constant 0 : i32
    return %arg0, %c0_i32 : i32, i32
  }
  func.func @transform_1(%arg0: i32) -> (i32, i32) {
    %c0_i32 = arith.constant 0 : i32
    %c0_i32_0 = arith.constant 0 : i32
    %c0_i32_1 = arith.constant 0 : i32
    return %c0_i32, %c0_i32_0 : i32, i32
  }
  func.func @transform_2(%arg0: i32) -> (i32, i32) {
    %c0_i32 = arith.constant 0 : i32
    %c0_i32_0 = arith.constant 0 : i32
    %c0_i32_1 = arith.constant 0 : i32
    return %c0_i32, %c0_i32_0 : i32, i32
  }
  func.func @transform_3(%arg0: i32) -> (i32, i32) {
    %c0_i32 = arith.constant 0 : i32
    %c0_i32_0 = arith.constant 0 : i32
    return %arg0, %c0_i32 : i32, i32
  }
}

</mosaic_0001>

<bundles_post_ra>
// kernel: tpu_custom_call.1
= control target key start
LH: loop header
LB: loop body
LE: loop exit
PB: predicated region body
PF: predicated region fallthrough
CT: control target
= control target key end

     0   :  { %8 = vsyncpa [#allocation3], 0  ;;  %s879_s0 = inlined_call_operand.hbm [shape: f32[16,32], index: 0, kind: input, shape index: {}]   ;;  %s880_s1 = inlined_call_operand.hbm [shape: f32[32,32], index: 1, kind: input, shape index: {}]   ;;  %s881_s2 = inlined_call_operand.vmem [shape: f32[1,32], index: 2, kind: input, shape index: {}]   ;;  %s882_s3 = inlined_call_operand.hbm [shape: f32[16,32], index: 3, kind: output, shape index: {}]  }
   0x1   :  { %10 = vsyncpa [#allocation3 + $0x1], 0 }
   0x2   :  { %11 = vsyncpa [#allocation6], 0 }
   0x3   :  { %12 = vsyncpa [#allocation4], 0 }
   0x4   :  { %14 = vsyncpa [#allocation4 + $0x1], 0  ;;  %s674_s12 = smov 0   ;;  %s676_s13 = smov 0  }
   0x5   :  { %s678_s14 = smov 0   ;;  %s680_s15 = smov 0  }
   0x6 LB: > { %s695_s16 = sadd.s32 4294967295, %s644_s15   ;;  %s412_s17 = sadd.s32 4294967294, %s644_s15   ;;  %s644_s15 = sphi %s680_s15, %s902_s15   ;;  %s640_s14 = sphi %s678_s14, %s901_s14   ;;  %s636_s13 = sphi %s676_s13, %s900_s13   ;;  %s632_s12 = sphi %s674_s12, %s899_s12  }
   0x7   : > { %p40_p0 = scmp.ne.s32.totalorder %s636_s13, %s632_s12  ;;  %p883_p1 = scmp.eq.s32.totalorder %s695_s16, 0 }
   0x8   : > { %p112_p3 = scmp.eq.s32.totalorder %s412_s17, 1  ;;  %p413_p5 = scmp.ge.s32.totalorder %s644_s15, 1 }
   0x9   : > { %p704_p4 = por %p883_p1, %p40_p0  ;;  %p119_p7 = scmp.lt.s32.totalorder %s644_s15, 3 }
   0xa   : > { %p709_p6 = por %p112_p3, %p40_p0  ;;  %s646_s21 = smov [#allocation5]  }
   0xb   : > { %s886_s18 = scalar_select %p704_p4, 1, 0 }
   0xc   : > { %s887_s19 = scalar_select %p709_p6, 1, 0 }
   0xd   : > { %p714_p8 = pnand %p413_p5, %p119_p7  ;;  %s131_s22 = sshll.u32 %s646_s21, 4  ;;  %s718_s22 = int_to_ptr.vmem [resolvable:$true] %s131_s22 }
   0xe   : > { %s730_s24 = sadd.s32 1, %s644_s15   ;;  %s27_s25 = sadd.s32 1, %s640_s14 }
   0xf   : > { %s888_s20 = scalar_select %p714_p8, 1, 0 }
  0x10   : > { %p458_p9 = pneg %p714_p8  ;;  %s24_s26 = ssub.s32 %s644_s15, %s730_s24 }
  0x11   : > { %s516_s29 = scalar_lea.hbm %s880_s1, 512 }
  0x12   : > { %p725_p11 = pnand %p458_p9, %p883_p1  ;;  %p517_p12 = scmp.ne.s32.totalorder %s880_s1, %s516_s29 }
  0x13   : > { %p523_p5 = scmp.lt.u32.totalorder %s516_s29, %s880_s1 }
  0x14   : > { %p518_p13 = pneg %p725_p11 }
  0x16   : > { %p519_p0 = pnand %p518_p13, %p517_p12 }
  0x18   : > { %p520_p3 = pneg %p519_p0 }
  0x1a   : > { %p525_p7 = pnand %p523_p5, %p520_p3 }
  0x1c   : > { %528 = shalt.err (!%p525_p7)
}
  0x1d   : > { %s529_s7 = scalar_lea.vmem %s718_s22, 512  ;;  %p537_p2 = scmp.lt.s32.totalorder %s718_s22, %s718_s22 }
  0x1e   : > { %p530_p9 = scmp.ne.s32.totalorder %s718_s22, %s529_s7  ;;  %p538_p6 = scmp.lt.s32.totalorder %s529_s7, %s529_s7 }
  0x20   : > { %p532_p10 = pnand %p530_p9, %p518_p13  ;;  %p539_p4 = por %p538_p6, %p537_p2 }
  0x22   : > { %p533_p1 = pneg %p532_p10 }
  0x24   : > { %p540_p8 = pnand %p539_p4, %p533_p1 }
  0x26   : > { %543 = shalt.err (!%p540_p8)
}
  0x27   : > { %s647_s8 = smov 128   ;;  %s648_s9 = smov 8  }
  0x28   : > { %461 = dma.hbm_to_vmem [thread:$0]  (!%p725_p11), %s880_s1, 512, %s718_s22, [#allocation6], %s647_s8, %s647_s8, %s648_s9  }
  0x29   : > { %p25_p2 = scmp.eq.s32.totalorder %s24_s26, 0  ;;  %p34_p1 = scmp.ne.s32.totalorder %s640_s14, %s636_s13 }
  0x2a   : > { %p35_p4 = scmp.eq.s32.totalorder %s644_s15, 0  ;;  %p471_p6 = scmp.lt.s32.totalorder %s644_s15, 2 }
  0x2b   : > { %s761_s17 = scalar_select %p25_p2, %s640_s14, %s27_s25  }
  0x2c   : > { %p36_p8 = por %p35_p4, %p34_p1  ;;  %p890_p10 = scmp.eq.s32.totalorder %s695_s16, 1 }
  0x2d   : > { %s148_s27 = sand.u32 1, %s640_s14   ;;  %s417_s28 = sshll.u32 %s644_s15, 7 }
  0x2e   : > { %p765_p12 = por %p890_p10, %p34_p1  ;;  %s416_s29 = sshll.u32 %s148_s27, 3 }
  0x2f   : > { %s774_s4 = scalar_lea.hbm %s879_s0, %s417_s28  ;;  %s152_s22 = scalar_lea.vmem [#allocation2], %s416_s29 }
  0x30   : > { %s159_s25 = sshll.u32 %s152_s22, 4  ;;  %p776_p11 = pnand %p471_p6, %p36_p8  ;;  %s780_s25 = int_to_ptr.vmem [resolvable:$true] %s159_s25 }
  0x31   : > { %s149_s5 = scalar_lea.sflag [#allocation3], %s148_s27  ;;  %s544_s6 = scalar_lea.hbm %s774_s4, 128 }
  0x32   : > { %p545_p13 = scmp.ne.s32.totalorder %s774_s4, %s544_s6  ;;  %p546_p0 = pneg %p776_p11 }
  0x33   : > { %s549_s9 = scalar_lea.hbm %s879_s0, 256  ;;  %p550_p7 = scmp.lt.u32.totalorder %s774_s4, %s879_s0 }
  0x34   : > { %p547_p3 = pnand %p546_p0, %p545_p13  ;;  %p551_p9 = scmp.lt.u32.totalorder %s549_s9, %s544_s6 }
  0x35   : > { %p553_p1 = scmp.lt.u32.totalorder %s544_s6, %s774_s4 }
  0x36   : > { %p548_p5 = pneg %p547_p3  ;;  %p552_p2 = por %p551_p9, %p550_p7 }
  0x38   : > { %p554_p4 = por %p553_p1, %p552_p2 }
  0x3a   : > { %p555_p6 = pnand %p554_p4, %p548_p5 }
  0x3c   : > { %558 = shalt.err (!%p555_p6)
}
  0x3d   : > { %s559_s27 = scalar_lea.vmem %s780_s25, 128  ;;  %s649_s28 = smov [#allocation2]  }
  0x3e   : > { %p560_p8 = scmp.ne.s32.totalorder %s780_s25, %s559_s27  ;;  %s564_s29 = sshll.u32 %s649_s28, 4  ;;  %s565_s29 = int_to_ptr.vmem [resolvable:$false] %s564_s29 }
  0x3f   : > { %s566_s23 = scalar_lea.vmem %s565_s29, 256  ;;  %p567_p3 = scmp.lt.s32.totalorder %s780_s25, %s565_s29 }
  0x40   : > { %p562_p10 = pnand %p560_p8, %p546_p0  ;;  %p568_p7 = scmp.lt.s32.totalorder %s566_s23, %s559_s27 }
  0x42   : > { %p563_p13 = pneg %p562_p10  ;;  %p569_p9 = por %p568_p7, %p567_p3 }
  0x44   : > { %p570_p2 = pnand %p569_p9, %p563_p13 }
  0x46   : > { %573 = shalt.err (!%p570_p2)
}
  0x47   : > { %465 = dma.hbm_to_vmem [thread:$0]  (!%p776_p11), %s774_s4, 128, %s780_s25, %s149_s5  }
  0x48   : > { %p893_p5 = scmp.ne.s32.totalorder %s888_s20, 0 }
  0x49   : > { %s810_s30 = sand.u32 (!%p893_p5), 1, %s636_s13   ;;  %p894_p0 = scmp.ne.s32.totalorder (!%p893_p5), %s886_s18, 0 }
  0x4a   : > { %168 = sbr.rel (%p893_p5) target bundleno = 379 (0x17b), region = 32  ;;  %s419_s22 = sshll.u32 (!%p893_p5), %s810_s30, 3 }
  0x4b   : > { %s171_s6 = scalar_lea.sflag (!%p893_p5), [#allocation3], %s810_s30  ;;  %s174_s7 = scalar_lea.vmem (!%p893_p5), [#allocation2], %s419_s22 }
  0x51   : > { %619 = dma.done.wait (%p894_p0), %s171_s6, 128  }
  0x52   : > { %621 = vsyncadd (%p894_p0), %s171_s6, 4294967168  ;;  %p895_p11 = scmp.eq.s32.totalorder %s695_s16, 0 }
  0x54   : > { %623 = dma.done.wait (%p895_p11), [#allocation6], 512   ;;  %p896_p1 = pmov %p895_p11 }
  0x55   : > { %v650_v0 = vmov 0.0|0.0   ;;  %vm651_vm0 = vmmov 0   ;;  %v652_v1 = vmov 0.0   ;;  %v202_v2 = vld [vmem:[#allocation5] sm:$0xff]  ;;  %v203_v3 = vld [vmem:[#allocation5 + $0x8] sm:$0xff]  ;;  %v204_v4 = vld [vmem:[#allocation5 + $0x10] sm:$0xff] }
  0x56   : > { %625 = vsyncadd (%p896_p1), [#allocation6], 4294966784  ;;  %444 = vmatprep.subr.bf16.mxu0 %v650_v0  ;;  %441 = vmatprep.mubr.msk.f32.mxu0 %vm651_vm0, %v652_v1  ;;  %v445_v5 = vpack.c.bf16 %v203_v3, %v202_v2  ;;  %v205_v6 = vld [vmem:[#allocation5 + $0x18] sm:$0xff]  ;;  %vm213_vm1 = vcmask 261120   ;;  %v422_v9 = vld [vmem:[%s881_s2] ss:$0 sm:$0xff] }
  0x57   : > { %v448_v7 = vpack.c.bf16 %v205_v6, %v204_v4  ;;  %v201_v8 = vld [vmem:[%s174_s7] sm:$0xff]  ;;  %s425_s4 = sshll.u32 %s695_s16, 7  ;;  %s200_s25 = scalar_lea.vmem [#allocation7], %s419_s22 }
  0x58   : > { %446 = vmatpush3.bf16.msra.mxu0 %v445_v5  ;;  %s332_s26 = sshll.u32 %s200_s25, 4  ;;  %s834_s9 = scalar_lea.hbm %s882_s3, %s425_s4  ;;  %s836_s26 = int_to_ptr.vmem [resolvable:$true] %s332_s26 }
  0x59   : > { %447 = vmatprep.subr.bf16.mxu0 %v650_v0  ;;  %s319_s10 = scalar_lea.sflag [#allocation4], %s810_s30  ;;  %s574_s11 = scalar_lea.vmem %s836_s26, 128 }
  0x5a   : > { %p575_p4 = scmp.ne.s32.totalorder %s836_s26, %s574_s11  ;;  %s653_s16 = smov [#allocation7]  }
  0x5b   : > { %s578_s27 = sshll.u32 %s653_s16, 4  ;;  %s579_s27 = int_to_ptr.vmem [resolvable:$false] %s578_s27 }
  0x5c   : > { %449 = vmatpush3.bf16.msra.mxu0 %v448_v7  ;;  %p576_p6 = pnand %p575_p4, %p765_p12  ;;  %s580_s28 = scalar_lea.vmem %s579_s27, 256 }
  0x5d   : > { %p581_p10 = scmp.lt.s32.totalorder %s836_s26, %s579_s27  ;;  %p582_p13 = scmp.lt.s32.totalorder %s580_s28, %s574_s11 }
  0x5e   : > { %p577_p8 = pneg %p576_p6 }
  0x5f   : > { %442 = vmatmul.mubr.msk.f32.vlgmr.msra.gmra.mrb[0].mxu0 %vm213_vm1, %v201_v8  ;;  %p583_p3 = por %p582_p13, %p581_p10 }
  0x61   : > { %p584_p7 = pnand %p583_p3, %p577_p8 }
 0x132   : > { %v283_v10 = vpop.f32.mrb[0].mxu0 }
 0x133   : > { %v284_v11 = vadd.f32 %v422_v9, %v283_v10  ;;  %v443_v12 = vpop.f32.mrb[1].mxu0 }
 0x135   : > { %v288_v13 = vmul.f32 0.70710677, %v284_v11  ;;  %v287_v38 = vmul.f32 0.5, %v284_v11 }
 0x137   : > { %v289_v14 = vand.u32 2147483647, %v288_v13  ;;  %vm311_vm2 = vcmp.ge.f32.partialorder %v288_v13, 0.0 }
 0x139   : > { %v290_v15 = vmul.f32 0.3275911, %v289_v14  ;;  %v305_v19 = vsub.f32 0.0, %v289_v14 }
 0x13b   : > { %v291_v16 = vadd.f32 1.0, %v290_v15  ;;  %v306_v22 = vmul.f32 %v305_v19, %v289_v14 }
 0x13d   : > { %512 = vrcp.f32 %v291_v16  ;;  %v307_v25 = vmul.f32 1.442695, %v306_v22 }
 0x13f   : > { %514 = vpow2.f32 %v307_v25 }
 0x147   : > { %v513_v17 = vpop.eup %512 }
 0x148   : > { %v293_v18 = vmul.f32 %v513_v17, %v291_v16 }
 0x149   : > { %v515_v33 = vpop.eup %514 }
 0x14a   : > { %v294_v20 = vsub.f32 2.0, %v293_v18 }
 0x14c   : > { %v295_v21 = vmul.f32 %v513_v17, %v294_v20 }
 0x14e   : > { %v296_v23 = vmul.f32 1.0614054, %v295_v21 }
 0x150   : > { %v297_v24 = vadd.f32 -1.4531521, %v296_v23 }
 0x152   : > { %v298_v26 = vmul.f32 %v297_v24, %v295_v21 }
 0x154   : > { %v299_v27 = vadd.f32 1.4214138, %v298_v26 }
 0x156   : > { %v300_v28 = vmul.f32 %v299_v27, %v295_v21 }
 0x158   : > { %v301_v29 = vadd.f32 -0.28449672, %v300_v28 }
 0x15a   : > { %v302_v30 = vmul.f32 %v301_v29, %v295_v21 }
 0x15c   : > { %v303_v31 = vadd.f32 0.2548296, %v302_v30 }
 0x15e   : > { %v304_v32 = vmul.f32 %v303_v31, %v295_v21 }
 0x160   : > { %v309_v34 = vmul.f32 %v515_v33, %v304_v32 }
 0x162   : > { %v310_v35 = vsub.f32 1.0, %v309_v34 }
 0x164   : > { %v312_v36 = vsub.f32 0.0, %v310_v35 }
 0x166   : > { %v313_v37 = vsel %vm311_vm2, %v310_v35, %v312_v36 }
 0x167   : > { %v314_v39 = vadd.f32 1.0, %v313_v37 }
 0x169   : > { %v315_v40 = vmul.f32 %v314_v39, %v287_v38 }
 0x16b   : > { %v316_v41 = vadd.f32 %v315_v40, %v201_v8 }
 0x16d   : > { %317 = vst.msk [vmem:[%s200_s25] sm:$0xff] %vm213_vm1, %v316_v41 }
 0x16e   : > { %587 = shalt.err (!%p584_p7)
}
 0x16f   : > { %s588_s29 = scalar_lea.hbm %s834_s9, 128  ;;  %s592_s22 = scalar_lea.hbm %s882_s3, 256 }
 0x170   : > { %p589_p9 = scmp.ne.s32.totalorder %s834_s9, %s588_s29  ;;  %p593_p0 = scmp.lt.u32.totalorder %s834_s9, %s882_s3 }
 0x171   : > { %p594_p11 = scmp.lt.u32.totalorder %s592_s22, %s588_s29  ;;  %p596_p4 = scmp.lt.u32.totalorder %s588_s29, %s834_s9 }
 0x172   : > { %p590_p2 = pnand %p589_p9, %p765_p12 }
 0x173   : > { %p595_p1 = por %p594_p11, %p593_p0 }
 0x174   : > { %p591_p5 = pneg %p590_p2 }
 0x175   : > { %p597_p6 = por %p596_p4, %p595_p1 }
 0x177   : > { %p598_p8 = pnand %p597_p6, %p591_p5 }
 0x179   : > { %601 = shalt.err (!%p598_p8)
}
 0x17a   : > { %456 = dma.vmem_to_hbm [thread:$0]  (%p765_p12), %s836_s26, 128, %s834_s9, %s319_s10  }
 0x17b PF: > { %s344_s18 = sand.u32 1, %s632_s12   ;;  %p897_p10 = scmp.ne.s32.totalorder %s887_s19, 0 }
 0x17c   : > { %p898_p13 = scmp.ge.s32.totalorder %s644_s15, 2  ;;  %s345_s20 = scalar_lea.sflag [#allocation4], %s344_s18 }
 0x17e   : > { %p467_p3 = pnand %p898_p13, %p897_p10 }
 0x180   : > { %627 = dma.done.wait (!%p467_p3), %s345_s20, 128  }
 0x181   : > { %629 = vsyncadd (!%p467_p3), %s345_s20, 4294967168  ;;  %p17_p7 = scmp.ge.s32.totalorder %s730_s24, 4   ;;  %s899_s12 = smov %s636_s13 }
 0x182   : > { %s900_s13 = smov %s640_s14  ;;  %s901_s14 = smov %s761_s17 }
 0x183   : > { %s902_s15 = smov %s730_s24  ;;  %19 = sbr.rel (!%p17_p7) target bundleno = 6 (0x6), region = 81 }
 0x18a   :  { %350 = vsyncpa [#allocation3], 1 }
 0x18b   :  { %352 = vsyncpa [#allocation3 + $0x1], 1 }
 0x18c   :  { %353 = vsyncpa [#allocation6], 1 }
 0x18d   :  { %354 = vsyncpa [#allocation4], 1 }
 0x18e   :  { %356 = vsyncpa [#allocation4 + $0x1], 1 }

</bundles_post_ra>
